<compile_context>
chip_gen: v5e
topology: v5e:2x2
jax: 0.10.0
libtpu: 0.0.40
codegen_flags: <defaults>
</compile_context>

<pallas_src>
import functools

import jax
import jax.numpy as jnp
from jax.experimental import pallas as pl
from jax.experimental.pallas import tpu as pltpu


def _bce_elem(x, t, logits):
    """Elementwise binary cross-entropy (f32), matching torch semantics.

    Non-logits path clamps log terms at -100 like F.binary_cross_entropy.
    Logits path uses the numerically stable BCE-with-logits formulation.
    """
    if logits:
        return jnp.maximum(x, 0.0) - x * t + jnp.log1p(jnp.exp(-jnp.abs(x)))
    log_p = jnp.maximum(jnp.log(x), -100.0)
    log_1mp = jnp.maximum(jnp.log1p(-x), -100.0)
    return -(t * log_p + (1.0 - t) * log_1mp)


def _focal_sum_kernel(x_ref, t_ref, o_ref, acc_ref, *, total, alpha, gamma, logits):
    """Tiled reduction: accumulate per-element focal loss, finalize mean."""
    step = pl.program_id(0)

    @pl.when(step == 0)
    def _():
        acc_ref[...] = jnp.zeros_like(acc_ref)

    x = x_ref[...].astype(jnp.float32)
    t = t_ref[...].astype(jnp.float32)
    tr, tl = x.shape

    bce = _bce_elem(x, t, logits)
    pt = jnp.exp(-bce)
    fl = (1.0 - pt) ** gamma * bce  # alpha applied once at finalize

    # Mask padded tail elements (flat index >= total). total < 2**31 assumed.
    row = jax.lax.broadcasted_iota(jnp.int32, (tr, tl), 0)
    col = jax.lax.broadcasted_iota(jnp.int32, (tr, tl), 1)
    flat = (step * tr + row) * tl + col
    fl = jnp.where(flat < total, fl, 0.0)

    # Full-tile accumulator: VPU-only adds per step; single XLU reduce at end.
    acc_ref[...] += fl

    @pl.when(step == pl.num_programs(0) - 1)
    def _():
        o_ref[0] = jnp.float32(alpha) * jnp.sum(acc_ref[...]) / jnp.float32(total)


def _focal_elem_kernel(x_ref, t_ref, o_ref, *, alpha, gamma, logits):
    """Elementwise focal loss (reduce=False path)."""
    x = x_ref[...].astype(jnp.float32)
    t = t_ref[...].astype(jnp.float32)
    bce = _bce_elem(x, t, logits)
    pt = jnp.exp(-bce)
    o_ref[...] = (alpha * (1.0 - pt) ** gamma * bce).astype(o_ref.dtype)


def _choose_tiling(total):
    tr = 8            # sublane-aligned rows per block
    tl = 512          # lane-dense (>= 4 x 128 lanes)
    max_tl = 32768    # 8*32768*4B = 1 MiB/buffer -> ~5 MiB VMEM; safe on v5e/v6e/v7x
    while tl < max_tl and tr * tl * 2 <= total:
        tl *= 2
    return tr, tl


def focal_loss(inputs, targets, alpha=1.0, gamma=2, logits=False, reduce=True):
    """Pallas TPU focal loss matching FocalLoss.forward."""
    orig_shape = inputs.shape
    total = 1
    for d in orig_shape:
        total *= d

    x = inputs.reshape(-1)
    t = targets.reshape(-1)

    tr, tl = _choose_tiling(total)
    block = tr * tl
    padded = pl.cdiv(total, block) * block
    if padded != total:
        x = jnp.pad(x, (0, padded - total))
        t = jnp.pad(t, (0, padded - total))
    n_rows = padded // tl
    x2 = x.reshape(n_rows, tl)
    t2 = t.reshape(n_rows, tl)
    grid = (n_rows // tr,)

    in_specs = [
        pl.BlockSpec((tr, tl), lambda i: (i, 0)),
        pl.BlockSpec((tr, tl), lambda i: (i, 0)),
    ]

    if reduce:
        kernel = functools.partial(
            _focal_sum_kernel,
            total=total, alpha=float(alpha), gamma=gamma, logits=bool(logits))
        out = pl.pallas_call(
            kernel,
            grid=grid,
            in_specs=in_specs,
            out_specs=pl.BlockSpec(memory_space=pltpu.MemorySpace.SMEM),
            out_shape=jax.ShapeDtypeStruct((1,), jnp.float32),
            scratch_shapes=[pltpu.VMEM((tr, tl), jnp.float32)],
            compiler_params=pltpu.CompilerParams(
                dimension_semantics=("arbitrary",)),
        )(x2, t2)
        return out[0]

    kernel = functools.partial(
        _focal_elem_kernel,
        alpha=float(alpha), gamma=gamma, logits=bool(logits))
    out = pl.pallas_call(
        kernel,
        grid=grid,
        in_specs=in_specs,
        out_specs=pl.BlockSpec((tr, tl), lambda i: (i, 0)),
        out_shape=jax.ShapeDtypeStruct((n_rows, tl), inputs.dtype),
        compiler_params=pltpu.CompilerParams(
            dimension_semantics=("parallel",)),
    )(x2, t2)
    return out.reshape(-1)[:total].reshape(orig_shape)


def _reference(inputs, targets, alpha=1.0, gamma=2, logits=False, reduce=True):
    x = inputs.astype(jnp.float32)
    t = targets.astype(jnp.float32)
    if logits:
        bce = jnp.maximum(x, 0.0) - x * t + jnp.log1p(jnp.exp(-jnp.abs(x)))
    else:
        bce = -(t * jnp.maximum(jnp.log(x), -100.0)
                + (1.0 - t) * jnp.maximum(jnp.log1p(-x), -100.0))
    pt = jnp.exp(-bce)
    fl = alpha * (1.0 - pt) ** gamma * bce
    return jnp.mean(fl) if reduce else fl


if __name__ == "__main__":
    key = jax.random.PRNGKey(0)
    k1, k2, k3 = jax.random.split(key, 3)

    # Small shapes consistent with the module's forward (NCHW).
    N, C, H, W = 2, 4, 16, 16
    probs = jax.nn.sigmoid(jax.random.normal(k1, (N, C, H, W), dtype=jnp.float32))
    raw_logits = jax.random.normal(k3, (N, C, H, W), dtype=jnp.float32)
    targets = (jax.random.uniform(k2, (N, C, H, W)) > 0.5).astype(jnp.float32)

    # Default module config: alpha=1, gamma=2, logits=False, reduce=True.
    loss = focal_loss(probs, targets)
    jax.block_until_ready(loss)
    ref = _reference(probs, targets)
    assert jnp.allclose(loss, ref, atol=1e-5, rtol=1e-5), (loss, ref)

    # logits=True path.
    loss_l = focal_loss(raw_logits, targets, logits=True)
    jax.block_until_ready(loss_l)
    ref_l = _reference(raw_logits, targets, logits=True)
    assert jnp.allclose(loss_l, ref_l, atol=1e-5, rtol=1e-5), (loss_l, ref_l)

    # reduce=False path (elementwise map).
    fl_map = focal_loss(probs, targets, reduce=False)
    jax.block_until_ready(fl_map)
    ref_map = _reference(probs, targets, reduce=False)
    assert jnp.allclose(fl_map, ref_map, atol=1e-5, rtol=1e-5)

    print("KERNEL_OK")
</pallas_src>

<mosaic_0001>
module attributes {stable_mosaic.version = 11 : i64} {
  func.func @_focal_sum_kernel(%arg0: i32, %arg1: memref<8x512xf32, #tpu.memory_space<vmem>>, %arg2: memref<8x512xf32, #tpu.memory_space<vmem>>, %arg3: memref<1xf32, #tpu.memory_space<smem>>, %arg4: memref<8x512xf32, #tpu.memory_space<vmem>>) attributes {dimension_semantics = [#tpu.dimension_semantics<arbitrary>], iteration_bounds = array<i64: 1>, scalar_prefetch = 0 : i64, scratch_operands = 1 : i64, tpu.core_type = #tpu.core_type<tc>, window_params = [{transform_indices = @transform_0, window_bounds = array<i64: 8, 512>}, {transform_indices = @transform_1, window_bounds = array<i64: 8, 512>}, {transform_indices = @transform_2, window_bounds = array<i64: 1>}]} {
    %c0_i32 = arith.constant 0 : i32
    %0 = arith.cmpi eq, %arg0, %c0_i32 : i32
    %1 = arith.extui %0 : i1 to i32
    %c0_i32_0 = arith.constant 0 : i32
    %2 = arith.cmpi ne, %1, %c0_i32_0 : i32
    scf.if %2 {
      %cst_17 = arith.constant 0.000000e+00 : f32
      %45 = vector.broadcast %cst_17 : f32 to vector<8x512xf32>
      %c0_18 = arith.constant 0 : index
      %c0_19 = arith.constant 0 : index
      %46 = vector.load %arg4[%c0_18, %c0_19] : memref<8x512xf32, #tpu.memory_space<vmem>>, vector<8x512xf32>
      tpu.vector_store %arg4[%c0_18, %c0_19], %45 {strides = array<i32>} : memref<8x512xf32, #tpu.memory_space<vmem>>, vector<8x512xf32>,
    } else {
    }
    %c0 = arith.constant 0 : index
    %c0_1 = arith.constant 0 : index
    %3 = vector.load %arg1[%c0, %c0_1] : memref<8x512xf32, #tpu.memory_space<vmem>>, vector<8x512xf32>
    %c0_2 = arith.constant 0 : index
    %c0_3 = arith.constant 0 : index
    %4 = vector.load %arg2[%c0_2, %c0_3] : memref<8x512xf32, #tpu.memory_space<vmem>>, vector<8x512xf32>
    %5 = math.log %3 : vector<8x512xf32>
    %cst = arith.constant -1.000000e+02 : f32
    %6 = vector.broadcast %cst : f32 to vector<8x512xf32>
    %7 = arith.maximumf %5, %6 : vector<8x512xf32>
    %cst_4 = arith.constant 0.000000e+00 : f32
    %8 = vector.broadcast %cst_4 : f32 to vector<8x512xf32>
    %9 = arith.subf %8, %3 : vector<8x512xf32>
    %10 = math.log1p %9 : vector<8x512xf32>
    %cst_5 = arith.constant -1.000000e+02 : f32
    %11 = vector.broadcast %cst_5 : f32 to vector<8x512xf32>
    %12 = arith.maximumf %10, %11 : vector<8x512xf32>
    %13 = arith.mulf %4, %7 : vector<8x512xf32>
    %cst_6 = arith.constant 1.000000e+00 : f32
    %14 = vector.broadcast %cst_6 : f32 to vector<8x512xf32>
    %15 = arith.subf %14, %4 : vector<8x512xf32>
    %16 = arith.mulf %15, %12 : vector<8x512xf32>
    %17 = arith.addf %13, %16 : vector<8x512xf32>
    %cst_7 = arith.constant 0.000000e+00 : f32
    %18 = vector.broadcast %cst_7 : f32 to vector<8x512xf32>
    %19 = arith.subf %18, %17 : vector<8x512xf32>
    %cst_8 = arith.constant 0.000000e+00 : f32
    %20 = vector.broadcast %cst_8 : f32 to vector<8x512xf32>
    %21 = arith.subf %20, %19 : vector<8x512xf32>
    %22 = math.exp %21 : vector<8x512xf32>
    %cst_9 = arith.constant 1.000000e+00 : f32
    %23 = vector.broadcast %cst_9 : f32 to vector<8x512xf32>
    %24 = arith.subf %23, %22 : vector<8x512xf32>
    %25 = arith.mulf %24, %24 : vector<8x512xf32>
    %26 = arith.mulf %25, %19 : vector<8x512xf32>
    %27 = tpu.iota {dimensions = array<i32: 0>} : vector<8x512xi32>
    %28 = tpu.iota {dimensions = array<i32: 1>} : vector<8x512xi32>
    %c8_i32 = arith.constant 8 : i32
    %29 = arith.muli %arg0, %c8_i32 : i32
    %30 = vector.broadcast %29 : i32 to vector<8x512xi32>
    %31 = arith.addi %30, %27 : vector<8x512xi32>
    %c512_i32 = arith.constant 512 : i32
    %32 = vector.broadcast %c512_i32 : i32 to vector<8x512xi32>
    %33 = arith.muli %31, %32 : vector<8x512xi32>
    %34 = arith.addi %33, %28 : vector<8x512xi32>
    %c2048_i32 = arith.constant 2048 : i32
    %35 = vector.broadcast %c2048_i32 : i32 to vector<8x512xi32>
    %36 = arith.cmpi slt, %34, %35 : vector<8x512xi32>
    %cst_10 = arith.constant 0.000000e+00 : f32
    %37 = vector.broadcast %cst_10 : f32 to vector<8x512xf32>
    %38 = arith.select %36, %26, %37 : vector<8x512xi1>, vector<8x512xf32>
    %c0_11 = arith.constant 0 : index
    %c0_12 = arith.constant 0 : index
    %39 = vector.load %arg4[%c0_11, %c0_12] : memref<8x512xf32, #tpu.memory_space<vmem>>, vector<8x512xf32>
    %40 = arith.addf %39, %38 : vector<8x512xf32>
    %c0_13 = arith.constant 0 : index
    %c0_14 = arith.constant 0 : index
    %41 = vector.load %arg4[%c0_13, %c0_14] : memref<8x512xf32, #tpu.memory_space<vmem>>, vector<8x512xf32>
    tpu.vector_store %arg4[%c0_13, %c0_14], %40 {strides = array<i32>} : memref<8x512xf32, #tpu.memory_space<vmem>>, vector<8x512xf32>,
    %c0_i32_15 = arith.constant 0 : i32
    %42 = arith.cmpi eq, %arg0, %c0_i32_15 : i32
    %43 = arith.extui %42 : i1 to i32
    %c0_i32_16 = arith.constant 0 : i32
    %44 = arith.cmpi ne, %43, %c0_i32_16 : i32
    scf.if %44 {
      %c0_17 = arith.constant 0 : index
      %c0_18 = arith.constant 0 : index
      %45 = vector.load %arg4[%c0_17, %c0_18] : memref<8x512xf32, #tpu.memory_space<vmem>>, vector<8x512xf32>
      %46 = vector.shape_cast %45 : vector<8x512xf32> to vector<1x8x512xf32>
      %cst_19 = arith.constant dense<0.000000e+00> : vector<1xf32>
      %47 = vector.multi_reduction <add>, %46, %cst_19 [1, 2] : vector<1x8x512xf32> to vector<1xf32>
      %48 = vector.shape_cast %47 : vector<1xf32> to vector<1x1x1xf32>
      %49 = vector.extract %48[0, 0, 0] : f32 from vector<1x1x1xf32>
      %cst_20 = arith.constant 1.000000e+00 : f32
      %50 = arith.mulf %cst_20, %49 : f32
      %cst_21 = arith.constant 2.048000e+03 : f32
      %51 = arith.divf %50, %cst_21 : f32
      %c0_22 = arith.constant 0 : index
      %52 = memref.load %arg3[%c0_22] : memref<1xf32, #tpu.memory_space<smem>>
      memref.store %51, %arg3[%c0_22] : memref<1xf32, #tpu.memory_space<smem>>
    } else {
    }
    return
  }
  func.func @transform_0(%arg0: i32) -> (i32, i32) {
    %c0_i32 = arith.constant 0 : i32
    %c0_i32_0 = arith.constant 0 : i32
    return %arg0, %c0_i32 : i32, i32
  }
  func.func @transform_1(%arg0: i32) -> (i32, i32) {
    %c0_i32 = arith.constant 0 : i32
    %c0_i32_0 = arith.constant 0 : i32
    return %arg0, %c0_i32 : i32, i32
  }
  func.func @transform_2(%arg0: i32) -> i32 {
    %c0_i32 = arith.constant 0 : i32
    %c0_i32_0 = arith.constant 0 : i32
    return %c0_i32 : i32
  }
}

</mosaic_0001>

<bundles_post_ra>
// kernel: tpu_custom_call.1
= control target key start
LH: loop header
LB: loop body
LE: loop exit
PB: predicated region body
PF: predicated region fallthrough
CT: control target
= control target key end

     0   :  { %7 = vsyncpa [#allocation4], 0  ;;  %s390_s0 = inlined_call_operand.hbm [shape: f32[8,512], index: 0, kind: input, shape index: {}]   ;;  %s391_s1 = inlined_call_operand.hbm [shape: f32[8,512], index: 1, kind: input, shape index: {}]   ;;  %s392_s2 = inlined_call_operand.hbm [shape: f32[1], index: 2, kind: output, shape index: {}]  }
   0x1   :  { %8 = vsyncpa [#allocation7], 0 }
   0x2   :  { %9 = vsyncpa [#allocation5], 0  ;;  %s15_s11 = sshll.u32 %s390_s0, 4  ;;  %s338_s12 = smov [#allocation3]   ;;  %s16_s11 = int_to_ptr.hbm [resolvable:$true] %s15_s11 }
   0x3   :  { %s17_s13 = sshll.u32 %s338_s12, 4  ;;  %s26_s16 = sshll.u32 %s391_s1, 4  ;;  %s18_s13 = int_to_ptr.vmem [resolvable:$true] %s17_s13  ;;  %s27_s16 = int_to_ptr.hbm [resolvable:$true] %s26_s16 }
   0x4   :  { %20 = dma.hbm_to_vmem [thread:$0]  %s16_s11, 512, %s18_s13, [#allocation4]  }
   0x5   :  { %s339_s17 = smov [#allocation6]  }
   0x6   :  { %s28_s18 = sshll.u32 %s339_s17, 4  ;;  %s29_s18 = int_to_ptr.vmem [resolvable:$true] %s28_s18 }
   0x7   :  { %31 = dma.hbm_to_vmem [thread:$0]  %s27_s16, 512, %s29_s18, [#allocation7]  }
   0x8   :  { %332 = dma.done.wait [#allocation4], 512  }
   0x9   :  { %333 = vsyncadd [#allocation4], 4294966784 }
   0xa   :  { %334 = dma.done.wait [#allocation7], 512  }
   0xb   :  { %335 = vsyncadd [#allocation7], 4294966784  ;;  %v48_v0 = vld [vmem:[#allocation3] sm:$0xff]  ;;  %v49_v1 = vld [vmem:[#allocation3 + $0x8] sm:$0xff]  ;;  %s226_s19 = sshll.u32 %s392_s2, 4  ;;  %s341_s23 = smov [#allocation8]   ;;  %s227_s19 = int_to_ptr.hbm [resolvable:$true] %s226_s19 }
   0xc   :  { %v50_v2 = vld [vmem:[#allocation3 + $0x10] sm:$0xff]  ;;  %v51_v3 = vld [vmem:[#allocation3 + $0x18] sm:$0xff]  ;;  %246 = vlog2.f32 %v48_v0  ;;  %v68_v4 = vsub.f32 0.0, %v48_v0  ;;  %v69_v5 = vsub.f32 0.0, %v49_v1  ;;  %v52_v13 = vld [vmem:[#allocation6] sm:$0xff] }
   0xd   :  { %v70_v6 = vsub.f32 0.0, %v50_v2  ;;  %248 = vlog2.f32 %v49_v1  ;;  %v71_v7 = vsub.f32 0.0, %v51_v3  ;;  %v116_v29 = vsub.f32 1.0, %v52_v13  ;;  %v53_v31 = vld [vmem:[#allocation6 + $0x8] sm:$0xff]  ;;  %v54_v37 = vld [vmem:[#allocation6 + $0x10] sm:$0xff]  ;;  %v55_v52 = vld [vmem:[#allocation6 + $0x18] sm:$0xff] }
   0xe   :  { %250 = vlog2.f32 %v50_v2  ;;  %v72_v8 = vadd.f32 1.0, %v68_v4  ;;  %v75_v9 = vmul.f32 -0.5, %v68_v4  ;;  %v81_v10 = vadd.f32 1.0, %v69_v5 }
   0xf   :  { %252 = vlog2.f32 %v51_v3  ;;  %v84_v11 = vmul.f32 -0.5, %v69_v5  ;;  %v90_v12 = vadd.f32 1.0, %v70_v6  ;;  %v78_v15 = vand.u32 2147483647, %v68_v4 }
  0x10   :  { %254 = vlog2.f32 %v72_v8  ;;  %v76_v14 = vadd.f32 1.0, %v75_v9  ;;  %v93_v16 = vmul.f32 -0.5, %v70_v6  ;;  %v87_v19 = vand.u32 2147483647, %v69_v5 }
  0x11   :  { %256 = vlog2.f32 %v81_v10  ;;  %v85_v18 = vadd.f32 1.0, %v84_v11  ;;  %v99_v20 = vadd.f32 1.0, %v71_v7  ;;  %v96_v24 = vand.u32 2147483647, %v70_v6 }
  0x12   :  { %v247_v17 = vpop.eup %246  ;;  %258 = vlog2.f32 %v90_v12  ;;  %v94_v23 = vadd.f32 1.0, %v93_v16  ;;  %v102_v25 = vmul.f32 -0.5, %v71_v7  ;;  %v105_v28 = vand.u32 2147483647, %v71_v7 }
  0x13   :  { %v249_v21 = vpop.eup %248  ;;  %v57_v22 = vmul.f32 0.6931472, %v247_v17  ;;  %260 = vlog2.f32 %v99_v20  ;;  %v77_v33 = vmul.f32 %v76_v14, %v68_v4  ;;  %vm363_vm0 = vcmp.lt.f32.partialorder %v78_v15, 0.0004427343 }
  0x14   :  { %v251_v26 = vpop.eup %250  ;;  %v59_v27 = vmul.f32 0.6931472, %v249_v21  ;;  %v103_v35 = vadd.f32 1.0, %v102_v25  ;;  %v86_v40 = vmul.f32 %v85_v18, %v69_v5  ;;  %vm367_vm1 = vcmp.lt.f32.partialorder %v87_v19, 0.0004427343 }
  0x15   :  { %v253_v30 = vpop.eup %252  ;;  %v61_v32 = vmul.f32 0.6931472, %v251_v26  ;;  %v64_v39 = vmax.f32 %v57_v22, -100.0  ;;  %v95_v45 = vmul.f32 %v94_v23, %v70_v6  ;;  %vm371_vm2 = vcmp.lt.f32.partialorder %v96_v24, 0.0004427343 }
  0x16   :  { %v255_v36 = vpop.eup %254  ;;  %v63_v38 = vmul.f32 0.6931472, %v253_v30  ;;  %v65_v43 = vmax.f32 %v59_v27, -100.0  ;;  %vm375_vm3 = vcmp.lt.f32.partialorder %v105_v28, 0.0004427343  ;;  %v117_v51 = vsub.f32 1.0, %v53_v31 }
  0x17   :  { %v257_v42 = vpop.eup %256  ;;  %v74_v44 = vmul.f32 0.6931472, %v255_v36  ;;  %v66_v48 = vmax.f32 %v61_v32, -100.0  ;;  %v104_v55 = vmul.f32 %v103_v35, %v71_v7  ;;  %v118_v56 = vsub.f32 1.0, %v54_v37 }
  0x18   :  { %v259_v47 = vpop.eup %258  ;;  %v83_v49 = vmul.f32 0.6931472, %v257_v42  ;;  %v67_v58 = vmax.f32 %v63_v38, -100.0  ;;  %v112_v61 = vmul.f32 %v64_v39, %v52_v13  ;;  %v113_v1 = vmul.f32 %v65_v43, %v53_v31 }
  0x19   :  { %v80_v53 = vsel %vm363_vm0, %v77_v33, %v74_v44  ;;  %v92_v54 = vmul.f32 0.6931472, %v259_v47  ;;  %v261_v57 = vpop.eup %260  ;;  %v114_v3 = vmul.f32 %v66_v48, %v54_v37  ;;  %v119_v4 = vsub.f32 1.0, %v55_v52 }
  0x1a   :  { %v89_v59 = vsel %vm367_vm1, %v86_v40, %v83_v49  ;;  %v108_v60 = vmax.f32 %v80_v53, -100.0  ;;  %v101_v63 = vmul.f32 0.6931472, %v261_v57  ;;  %v115_v9 = vmul.f32 %v67_v58, %v55_v52 }
  0x1b   :  { %v98_v62 = vsel %vm371_vm2, %v95_v45, %v92_v54  ;;  %v109_v0 = vmax.f32 %v89_v59, -100.0  ;;  %v156_v16 = vlaneseq }
  0x1c   :  { %v110_v2 = vmax.f32 %v98_v62, -100.0  ;;  %v120_v5 = vmul.f32 %v116_v29, %v108_v60  ;;  %v107_v6 = vsel %vm375_vm3, %v104_v55, %v101_v63  ;;  %v340_v62 = vmov 2048.0  }
  0x1d   :  { %v121_v7 = vmul.f32 %v117_v51, %v109_v0  ;;  %v111_v8 = vmax.f32 %v107_v6, -100.0  ;;  %v157_v25 = vshrl.u32 %v156_v16, 7  ;;  %v159_v27 = vand.u32 127, %v156_v16 }
  0x1e   :  { %v122_v10 = vmul.f32 %v118_v56, %v110_v2  ;;  %v124_v11 = vadd.f32 %v120_v5, %v112_v61 }
  0x1f   :  { %v125_v12 = vadd.f32 %v121_v7, %v113_v1  ;;  %v123_v13 = vmul.f32 %v119_v4, %v111_v8  ;;  %v166_v31 = vmul.u32 512, %v157_v25  ;;  %v160_v32 = vadd.s32 128, %v159_v27 }
  0x20   :  { %v126_v14 = vadd.f32 %v122_v10, %v114_v3  ;;  %v128_v15 = vsub.f32 0.0, %v124_v11  ;;  %v161_v33 = vadd.s32 256, %v159_v27  ;;  %v162_v35 = vadd.s32 384, %v159_v27 }
  0x21   :  { %v129_v17 = vsub.f32 0.0, %v125_v12  ;;  %v127_v18 = vadd.f32 %v123_v13, %v115_v9  ;;  %v167_v36 = vadd.s32 %v166_v31, %v159_v27  ;;  %v168_v39 = vadd.s32 %v166_v31, %v160_v32 }
  0x22   :  { %v130_v19 = vsub.f32 0.0, %v126_v14  ;;  %v132_v20 = vsub.f32 0.0, %v128_v15  ;;  %v169_v42 = vadd.s32 %v166_v31, %v161_v33  ;;  %v170_v47 = vadd.s32 %v166_v31, %v162_v35 }
  0x23   :  { %v133_v21 = vsub.f32 0.0, %v129_v17  ;;  %v131_v22 = vsub.f32 0.0, %v127_v18  ;;  %vm171_vm4 = vcmp.lt.s32.totalorder %v167_v36, 2048  ;;  %vm172_vm5 = vcmp.lt.s32.totalorder %v168_v39, 2048 }
  0x24   :  { %v134_v23 = vsub.f32 0.0, %v130_v19  ;;  %v136_v24 = vmul.f32 1.442695, %v132_v20  ;;  %vm173_vm6 = vcmp.lt.s32.totalorder %v169_v42, 2048  ;;  %vm174_vm7 = vcmp.lt.s32.totalorder %v170_v47, 2048 }
  0x25   :  { %v138_v26 = vmul.f32 1.442695, %v133_v21  ;;  %v135_v28 = vsub.f32 0.0, %v131_v22 }
  0x26   :  { %262 = vpow2.f32 %v136_v24  ;;  %v140_v29 = vmul.f32 1.442695, %v134_v23 }
  0x27   :  { %264 = vpow2.f32 %v138_v26  ;;  %v142_v30 = vmul.f32 1.442695, %v135_v28 }
  0x28   :  { %266 = vpow2.f32 %v140_v29 }
  0x29   :  { %268 = vpow2.f32 %v142_v30 }
  0x2a   :  { %270 = vrcp.f32 %v340_v62 }
  0x2c   :  { %v263_v34 = vpop.eup %262 }
  0x2d   :  { %v265_v37 = vpop.eup %264  ;;  %v144_v38 = vsub.f32 1.0, %v263_v34 }
  0x2e   :  { %v267_v40 = vpop.eup %266  ;;  %v145_v41 = vsub.f32 1.0, %v265_v37 }
  0x2f   :  { %v146_v43 = vsub.f32 1.0, %v267_v40  ;;  %v148_v44 = vmul.f32 %v144_v38, %v144_v38  ;;  %v269_v45 = vpop.eup %268 }
  0x30   :  { %v149_v46 = vmul.f32 %v145_v41, %v145_v41  ;;  %v147_v48 = vsub.f32 1.0, %v269_v45  ;;  %v271_v63 = vpop.eup %270 }
  0x31   :  { %v150_v49 = vmul.f32 %v146_v43, %v146_v43  ;;  %v152_v50 = vmul.f32 %v148_v44, %v128_v15  ;;  %v211_v0 = vmul.f32 2048.0, %v271_v63  ;;  %vm215_vm8 = vweird.f32 %v271_v63 }
  0x32   :  { %v153_v51 = vmul.f32 %v149_v46, %v129_v17  ;;  %v151_v52 = vmul.f32 %v147_v48, %v147_v48 }
  0x33   :  { %v154_v53 = vmul.f32 %v150_v49, %v130_v19  ;;  %v175_v54 = vsel %vm171_vm4, %v152_v50, 0.0  ;;  %v212_v1 = vsub.f32 1.0, %v211_v0 }
  0x34   :  { %v176_v55 = vsel %vm172_vm5, %v153_v51, 0.0  ;;  %v155_v56 = vmul.f32 %v151_v52, %v131_v22 }
  0x35   :  { %v177_v57 = vsel %vm173_vm6, %v154_v53, 0.0  ;;  %v198_v58 = vadd.f32 %v176_v55, %v175_v54  ;;  %v213_v5 = vmul.f32 %v271_v63, %v212_v1 }
  0x36   :  { %v178_v59 = vsel %vm174_vm7, %v155_v56, 0.0 }
  0x37   :  { %v199_v60 = vadd.f32 %v198_v58, %v177_v57  ;;  %v214_v8 = vadd.f32 %v271_v63, %v213_v5 }
  0x39   :  { %v200_v61 = vadd.f32 %v199_v60, %v178_v59  ;;  %v216_v11 = vsel %vm215_vm8, %v271_v63, %v214_v8 }
  0x3b   :  { %201 = vadd.xlane.f32.xlu0 %v200_v61 }
  0xae   :  { %v202_v2 = vpop.xlane.xlu0 %201 }
  0xaf   :  { %v203_v3 = vrot.slane %v202_v2, 4 }
  0xb1   :  { %v204_v4 = vadd.f32 %v203_v3, %v202_v2 }
  0xb3   :  { %v205_v6 = vrot.slane %v204_v4, 2 }
  0xb5   :  { %v206_v7 = vadd.f32 %v205_v6, %v204_v4 }
  0xb7   :  { %v207_v9 = vrot.slane %v206_v7, 1 }
  0xb9   :  { %v208_v10 = vadd.f32 %v207_v9, %v206_v7 }
  0xbb   :  { %238 = vpush %v208_v10 }
  0xbc   :  { %240 = vpush %v216_v11 }
  0xec   :  { %s239_s20 = spop %238 }
  0xed   :  { %s241_s21 = spop %240 }
  0xee   :  { %s218_s22 = smul.f32 %s241_s21, %s239_s20 }
  0xf0   :  { %220 = sst [smem:[#allocation8]] %s218_s22 }
  0xf1   :  { %229 = dma.smem_to_hbm %s341_s23, 16, %s227_s19, [#allocation5]  }
  0xf2   :  { %336 = dma.done.wait [#allocation5], 16  }
  0xf3   :  { %337 = vsyncadd [#allocation5], 4294967280 }
  0xf4   :  { %234 = sfence }
  0xf5   :  { %235 = vsyncpa [#allocation4], 1 }
  0xf6   :  { %236 = vsyncpa [#allocation7], 1 }
  0xf7   :  { %237 = vsyncpa [#allocation5], 1 }

</bundles_post_ra>
